<compile_context>
chip_gen: v7x
topology: tpu7x:2x2x1
jax: 0.10.0
libtpu: 0.0.40
codegen_flags: <defaults>
</compile_context>

<pallas_src>
import jax
import jax.numpy as jnp
import numpy as np
from jax.experimental import pallas as pl
from jax.experimental.pallas import tpu as pltpu


def _transop_kernel(mw_ref,     # (5,) SMEM  (scalar-prefetch) mixing weights
                    x_ref,      # (1, Np, D)     node features of this type
                    sh_ref,     # (2, Np, Np)    [shift-down, shift-up] matrices
                    w_ref,      # (1, 3, D, 4D)  fused weight taps (xp, x, xn)
                    b_ref,      # (1, 1, 4D)     fused bias
                    s_ref,      # (4D, D)        mix-reduce matrix (mw_i * I)
                    o_ref):     # (1, Np, D)
    f32 = jnp.float32
    x = x_ref[0]                                               # (Np, D)

    # k=3 conv shifts built in-kernel (no extra HBM streams); the zero rows of
    # the sub-/super-diagonal identities reproduce Conv1d padding=1 exactly.
    xp = jnp.dot(sh_ref[0], x, preferred_element_type=f32)     # row i -> x[i-1]
    xn = jnp.dot(sh_ref[1], x, preferred_element_type=f32)     # row i -> x[i+1]

    # Fused pre-activation: [linear | rel-linear | conv | rel-conv] packed
    # along 4*D = 128 output lanes; one bias add, one relu.
    pre = (jnp.dot(xp, w_ref[0, 0], preferred_element_type=f32)
           + jnp.dot(x,  w_ref[0, 1], preferred_element_type=f32)
           + jnp.dot(xn, w_ref[0, 2], preferred_element_type=f32)
           + b_ref[0])
    y = jnp.maximum(pre, 0.0)                                  # (Np, 4D) lane-dense

    # class_sum: matmul-reduce of the 4 relu'd branches + identity branch.
    o_ref[0] = (jnp.dot(y, s_ref[...], preferred_element_type=f32)
                + mw_ref[4] * x).astype(o_ref.dtype)


def transop_forward(data, mix_w, w0, b0, w1, b1, c0, bc0, c1, bc1):
    """Run TransOp for ALL node types in one pallas_call.

    data: dict {ntype: (N_t, D)} float32.  Per-type params are dicts keyed the
    same way.  All weight matrices use (in, out) layout; conv taps are
    (3, in, out) with tap 0/1/2 applying to x[n-1]/x[n]/x[n+1].
    """
    types = list(data.keys())
    T = len(types)
    D = w0.shape[0]
    n_pad = max(int(data[t].shape[0]) for t in types)
    n_pad = ((n_pad + 7) // 8) * 8                     # sublane-friendly rows

    # --- stack node features (zero-pad short types; padded rows are discarded)
    rows = []
    for t in types:
        xt = data[t].astype(jnp.float32)
        rows.append(jnp.pad(xt, ((0, n_pad - xt.shape[0]), (0, 0))))
    x_stack = jnp.stack(rows, axis=0)                  # (T, Np, D)

    # --- shift matrices for the k=3 / padding=1 conv (shared across types)
    dsh = jnp.eye(n_pad, k=-1, dtype=jnp.float32)      # (dsh @ x)[i] = x[i-1]
    ush = jnp.eye(n_pad, k=+1, dtype=jnp.float32)      # (ush @ x)[i] = x[i+1]
    shift_mats = jnp.stack([dsh, ush], axis=0)         # (2, Np, Np)

    # --- fused per-type weights: 4 branches packed along 4*D output lanes
    zdd = jnp.zeros((D, D), jnp.float32)
    w_list, b_list = [], []
    for t in types:
        tap_p = jnp.concatenate([zdd, zdd, c0[0], c1[t][0]], axis=1)   # xp tap
        tap_c = jnp.concatenate([w0, w1[t], c0[1], c1[t][1]], axis=1)  # x  tap
        tap_n = jnp.concatenate([zdd, zdd, c0[2], c1[t][2]], axis=1)   # xn tap
        w_list.append(jnp.stack([tap_p, tap_c, tap_n], axis=0))        # (3,D,4D)
        b_list.append(jnp.concatenate([b0, b1[t], bc0, bc1[t]])[None, :])
    w_stack = jnp.stack(w_list, axis=0)                # (T, 3, D, 4D)
    b_stack = jnp.stack(b_list, axis=0)                # (T, 1, 4D)

    # --- mix-reduce matrix: block stack of mw_i * I_D (branches 0..3)
    eye = jnp.eye(D, dtype=jnp.float32)
    s_mat = jnp.concatenate(
        [mix_w[0] * eye, mix_w[1] * eye, mix_w[2] * eye, mix_w[3] * eye],
        axis=0)                                        # (4D, D)

    grid_spec = pltpu.PrefetchScalarGridSpec(
        num_scalar_prefetch=1,                         # mix weights -> SMEM
        grid=(T,),
        in_specs=[
            pl.BlockSpec((1, n_pad, D), lambda t, mw: (t, 0, 0)),
            pl.BlockSpec((2, n_pad, n_pad), lambda t, mw: (0, 0, 0)),
            pl.BlockSpec((1, 3, D, 4 * D), lambda t, mw: (t, 0, 0, 0)),
            pl.BlockSpec((1, 1, 4 * D), lambda t, mw: (t, 0, 0)),
            pl.BlockSpec((4 * D, D), lambda t, mw: (0, 0)),
        ],
        out_specs=pl.BlockSpec((1, n_pad, D), lambda t, mw: (t, 0, 0)),
    )

    out = pl.pallas_call(
        _transop_kernel,
        out_shape=jax.ShapeDtypeStruct((T, n_pad, D), jnp.float32),
        grid_spec=grid_spec,
        compiler_params=pltpu.CompilerParams(
            dimension_semantics=("parallel",)),        # one type per TC on v7x
    )(mix_w, x_stack, shift_mats, w_stack, b_stack, s_mat)

    return {t: out[i, :data[t].shape[0], :] for i, t in enumerate(types)}


def transop_ref(x, mix_w, w0, b0, w1, b1, c0, bc0, c1, bc1):
    """Pure-JAX reference for one node type."""
    N, D = x.shape
    xp = jnp.concatenate([jnp.zeros((1, D), x.dtype), x[:-1]], axis=0)
    xn = jnp.concatenate([x[1:], jnp.zeros((1, D), x.dtype)], axis=0)
    lin0 = jax.nn.relu(x @ w0 + b0)
    lin1 = jax.nn.relu(x @ w1 + b1)
    conv0 = jax.nn.relu(xp @ c0[0] + x @ c0[1] + xn @ c0[2] + bc0)
    conv1 = jax.nn.relu(xp @ c1[0] + x @ c1[1] + xn @ c1[2] + bc1)
    return (mix_w[0] * lin0 + mix_w[1] * lin1 + mix_w[2] * conv0
            + mix_w[3] * conv1 + mix_w[4] * x)


def _uniform(key, shape, fan_in):
    bound = 1.0 / np.sqrt(fan_in)
    return jax.random.uniform(key, shape, jnp.float32, -bound, bound)


if __name__ == "__main__":
    D = 32                      # in_dim == out_dim (required so 'identity' sums)
    ntype_list = ["a", "b"]     # heterogeneous-graph node types
    n_nodes = {"a": 64, "b": 32}

    key = jax.random.PRNGKey(0)
    keys = iter(jax.random.split(key, 64))

    # --- deterministic parameter init (shapes match the PyTorch module) ---
    w0 = _uniform(next(keys), (D, D), D)          # shared Linear, (in, out)
    b0 = _uniform(next(keys), (D,), D)
    w1 = {t: _uniform(next(keys), (D, D), D) for t in ntype_list}
    b1 = {t: _uniform(next(keys), (D,), D) for t in ntype_list}
    c0 = _uniform(next(keys), (3, D, D), D * 3)   # shared Conv1d taps (3,in,out)
    bc0 = _uniform(next(keys), (D,), D * 3)
    c1 = {t: _uniform(next(keys), (3, D, D), D * 3) for t in ntype_list}
    bc1 = {t: _uniform(next(keys), (D,), D * 3) for t in ntype_list}
    mix_w = jax.nn.softmax(jax.random.normal(next(keys), (5,), jnp.float32))

    # --- input data: dict of node-type feature matrices ---
    data = {t: jax.random.normal(next(keys), (n_nodes[t], D), jnp.float32)
            for t in ntype_list}

    # --- run the single fused Pallas kernel and verify vs reference ---
    out = transop_forward(data, mix_w, w0, b0, w1, b1, c0, bc0, c1, bc1)
    out = jax.block_until_ready(out)

    for t in ntype_list:
        ref = transop_ref(data[t], mix_w, w0, b0, w1[t], b1[t],
                          c0, bc0, c1[t], bc1[t])
        np.testing.assert_allclose(np.asarray(out[t]), np.asarray(ref),
                                   rtol=1e-4, atol=1e-5)

    print("KERNEL_OK")
</pallas_src>

<mosaic_0001>
module attributes {stable_mosaic.version = 11 : i64} {
  func.func @_transop_kernel(%arg0: i32, %arg1: memref<5xf32, #tpu.memory_space<smem>>, %arg2: memref<1x64x32xf32, #tpu.memory_space<vmem>>, %arg3: memref<2x64x64xf32, #tpu.memory_space<vmem>>, %arg4: memref<1x3x32x128xf32, #tpu.memory_space<vmem>>, %arg5: memref<1x1x128xf32, #tpu.memory_space<vmem>>, %arg6: memref<128x32xf32, #tpu.memory_space<vmem>>, %arg7: memref<1x64x32xf32, #tpu.memory_space<vmem>>) attributes {dimension_semantics = [#tpu.dimension_semantics<parallel>], iteration_bounds = array<i64: 2>, scalar_prefetch = 1 : i64, scratch_operands = 0 : i64, tpu.core_type = #tpu.core_type<tc>, window_params = [{transform_indices = @transform_0, window_bounds = array<i64: 1, 64, 32>}, {pipeline_mode = #tpu.pipeline_mode<synchronous>, transform_indices = @transform_1, window_bounds = array<i64: 2, 64, 64>}, {transform_indices = @transform_2, window_bounds = array<i64: 1, 3, 32, 128>}, {transform_indices = @transform_3, window_bounds = array<i64: 1, 1, 128>}, {pipeline_mode = #tpu.pipeline_mode<synchronous>, transform_indices = @transform_4, window_bounds = array<i64: 128, 32>}, {transform_indices = @transform_5, window_bounds = array<i64: 1, 64, 32>}]} {
    %c0 = arith.constant 0 : index
    %c0_0 = arith.constant 0 : index
    %c0_1 = arith.constant 0 : index
    %0 = vector.load %arg2[%c0, %c0_0, %c0_1] : memref<1x64x32xf32, #tpu.memory_space<vmem>>, vector<1x64x32xf32>
    %1 = vector.shape_cast %0 : vector<1x64x32xf32> to vector<64x32xf32>
    %c0_2 = arith.constant 0 : index
    %c0_3 = arith.constant 0 : index
    %c0_4 = arith.constant 0 : index
    %2 = vector.load %arg3[%c0_2, %c0_3, %c0_4] : memref<2x64x64xf32, #tpu.memory_space<vmem>>, vector<1x64x64xf32>
    %3 = vector.shape_cast %2 : vector<1x64x64xf32> to vector<64x64xf32>
    %cst = arith.constant dense<0.000000e+00> : vector<64x32xf32>
    %4 = tpu.matmul %3, %1, %cst {dimension_numbers = #tpu.dot_dimension_numbers<[1], [0], [0], [1], [0, 0, 1, 1], [], []>} : vector<64x64xf32>, vector<64x32xf32>, vector<64x32xf32> -> vector<64x32xf32>
    %c1 = arith.constant 1 : index
    %c0_5 = arith.constant 0 : index
    %c0_6 = arith.constant 0 : index
    %5 = vector.load %arg3[%c1, %c0_5, %c0_6] : memref<2x64x64xf32, #tpu.memory_space<vmem>>, vector<1x64x64xf32>
    %6 = vector.shape_cast %5 : vector<1x64x64xf32> to vector<64x64xf32>
    %cst_7 = arith.constant dense<0.000000e+00> : vector<64x32xf32>
    %7 = tpu.matmul %6, %1, %cst_7 {dimension_numbers = #tpu.dot_dimension_numbers<[1], [0], [0], [1], [0, 0, 1, 1], [], []>} : vector<64x64xf32>, vector<64x32xf32>, vector<64x32xf32> -> vector<64x32xf32>
    %c0_8 = arith.constant 0 : index
    %c0_9 = arith.constant 0 : index
    %c0_10 = arith.constant 0 : index
    %c0_11 = arith.constant 0 : index
    %8 = vector.load %arg4[%c0_8, %c0_9, %c0_10, %c0_11] : memref<1x3x32x128xf32, #tpu.memory_space<vmem>>, vector<1x1x32x128xf32>
    %9 = vector.shape_cast %8 : vector<1x1x32x128xf32> to vector<32x128xf32>
    %cst_12 = arith.constant dense<0.000000e+00> : vector<64x128xf32>
    %10 = tpu.matmul %4, %9, %cst_12 {dimension_numbers = #tpu.dot_dimension_numbers<[1], [0], [0], [1], [0, 0, 1, 1], [], []>} : vector<64x32xf32>, vector<32x128xf32>, vector<64x128xf32> -> vector<64x128xf32>
    %c0_13 = arith.constant 0 : index
    %c1_14 = arith.constant 1 : index
    %c0_15 = arith.constant 0 : index
    %c0_16 = arith.constant 0 : index
    %11 = vector.load %arg4[%c0_13, %c1_14, %c0_15, %c0_16] : memref<1x3x32x128xf32, #tpu.memory_space<vmem>>, vector<1x1x32x128xf32>
    %12 = vector.shape_cast %11 : vector<1x1x32x128xf32> to vector<32x128xf32>
    %cst_17 = arith.constant dense<0.000000e+00> : vector<64x128xf32>
    %13 = tpu.matmul %1, %12, %cst_17 {dimension_numbers = #tpu.dot_dimension_numbers<[1], [0], [0], [1], [0, 0, 1, 1], [], []>} : vector<64x32xf32>, vector<32x128xf32>, vector<64x128xf32> -> vector<64x128xf32>
    %14 = arith.addf %10, %13 : vector<64x128xf32>
    %c0_18 = arith.constant 0 : index
    %c2 = arith.constant 2 : index
    %c0_19 = arith.constant 0 : index
    %c0_20 = arith.constant 0 : index
    %15 = vector.load %arg4[%c0_18, %c2, %c0_19, %c0_20] : memref<1x3x32x128xf32, #tpu.memory_space<vmem>>, vector<1x1x32x128xf32>
    %16 = vector.shape_cast %15 : vector<1x1x32x128xf32> to vector<32x128xf32>
    %cst_21 = arith.constant dense<0.000000e+00> : vector<64x128xf32>
    %17 = tpu.matmul %7, %16, %cst_21 {dimension_numbers = #tpu.dot_dimension_numbers<[1], [0], [0], [1], [0, 0, 1, 1], [], []>} : vector<64x32xf32>, vector<32x128xf32>, vector<64x128xf32> -> vector<64x128xf32>
    %18 = arith.addf %14, %17 : vector<64x128xf32>
    %c0_22 = arith.constant 0 : index
    %c0_23 = arith.constant 0 : index
    %c0_24 = arith.constant 0 : index
    %19 = vector.load %arg5[%c0_22, %c0_23, %c0_24] : memref<1x1x128xf32, #tpu.memory_space<vmem>>, vector<1x1x128xf32>
    %20 = vector.shape_cast %19 : vector<1x1x128xf32> to vector<1x128xf32>
    %21 = vector.broadcast %20 : vector<1x128xf32> to vector<64x128xf32>
    %22 = arith.addf %18, %21 : vector<64x128xf32>
    %cst_25 = arith.constant 0.000000e+00 : f32
    %23 = vector.broadcast %cst_25 : f32 to vector<64x128xf32>
    %24 = arith.maximumf %22, %23 : vector<64x128xf32>
    %c0_26 = arith.constant 0 : index
    %c0_27 = arith.constant 0 : index
    %25 = vector.load %arg6[%c0_26, %c0_27] : memref<128x32xf32, #tpu.memory_space<vmem>>, vector<128x32xf32>
    %cst_28 = arith.constant dense<0.000000e+00> : vector<64x32xf32>
    %26 = tpu.matmul %24, %25, %cst_28 {dimension_numbers = #tpu.dot_dimension_numbers<[1], [0], [0], [1], [0, 0, 1, 1], [], []>} : vector<64x128xf32>, vector<128x32xf32>, vector<64x32xf32> -> vector<64x32xf32>
    %c4 = arith.constant 4 : index
    %27 = memref.load %arg1[%c4] : memref<5xf32, #tpu.memory_space<smem>>
    %28 = vector.broadcast %27 : f32 to vector<64x32xf32>
    %29 = arith.mulf %28, %1 : vector<64x32xf32>
    %30 = arith.addf %26, %29 : vector<64x32xf32>
    %c0_29 = arith.constant 0 : index
    %c0_30 = arith.constant 0 : index
    %c0_31 = arith.constant 0 : index
    %31 = vector.load %arg7[%c0_29, %c0_30, %c0_31] : memref<1x64x32xf32, #tpu.memory_space<vmem>>, vector<1x64x32xf32>
    %32 = vector.shape_cast %31 : vector<1x64x32xf32> to vector<64x32xf32>
    %33 = vector.shape_cast %30 : vector<64x32xf32> to vector<1x64x32xf32>
    tpu.vector_store %arg7[%c0_29, %c0_30, %c0_31], %33 {strides = array<i32>} : memref<1x64x32xf32, #tpu.memory_space<vmem>>, vector<1x64x32xf32>,
    return
  }
  func.func @transform_0(%arg0: i32, %arg1: memref<5xf32, #tpu.memory_space<smem>>) -> (i32, i32, i32) {
    %c0_i32 = arith.constant 0 : i32
    %c0_i32_0 = arith.constant 0 : i32
    %c0_i32_1 = arith.constant 0 : i32
    return %arg0, %c0_i32, %c0_i32_0 : i32, i32, i32
  }
  func.func @transform_1(%arg0: i32, %arg1: memref<5xf32, #tpu.memory_space<smem>>) -> (i32, i32, i32) {
    %c0_i32 = arith.constant 0 : i32
    %c0_i32_0 = arith.constant 0 : i32
    %c0_i32_1 = arith.constant 0 : i32
    %c0_i32_2 = arith.constant 0 : i32
    return %c0_i32, %c0_i32_0, %c0_i32_1 : i32, i32, i32
  }
  func.func @transform_2(%arg0: i32, %arg1: memref<5xf32, #tpu.memory_space<smem>>) -> (i32, i32, i32, i32) {
    %c0_i32 = arith.constant 0 : i32
    %c0_i32_0 = arith.constant 0 : i32
    %c0_i32_1 = arith.constant 0 : i32
    %c0_i32_2 = arith.constant 0 : i32
    return %arg0, %c0_i32, %c0_i32_0, %c0_i32_1 : i32, i32, i32, i32
  }
  func.func @transform_3(%arg0: i32, %arg1: memref<5xf32, #tpu.memory_space<smem>>) -> (i32, i32, i32) {
    %c0_i32 = arith.constant 0 : i32
    %c0_i32_0 = arith.constant 0 : i32
    %c0_i32_1 = arith.constant 0 : i32
    return %arg0, %c0_i32, %c0_i32_0 : i32, i32, i32
  }
  func.func @transform_4(%arg0: i32, %arg1: memref<5xf32, #tpu.memory_space<smem>>) -> (i32, i32) {
    %c0_i32 = arith.constant 0 : i32
    %c0_i32_0 = arith.constant 0 : i32
    %c0_i32_1 = arith.constant 0 : i32
    return %c0_i32, %c0_i32_0 : i32, i32
  }
  func.func @transform_5(%arg0: i32, %arg1: memref<5xf32, #tpu.memory_space<smem>>) -> (i32, i32, i32) {
    %c0_i32 = arith.constant 0 : i32
    %c0_i32_0 = arith.constant 0 : i32
    %c0_i32_1 = arith.constant 0 : i32
    return %arg0, %c0_i32, %c0_i32_0 : i32, i32, i32
  }
}

</mosaic_0001>

<bundles_post_ra>
// kernel: tpu_custom_call.1
= control target key start
LH: loop header
LB: loop body
LE: loop exit
PB: predicated region body
PF: predicated region fallthrough
CT: control target
= control target key end

     0   :  { %s1927_s0 = inlined_call_operand.vmem [shape: f32[5], index: 0, kind: input, shape index: {}]   ;;  %s1928_s1 = inlined_call_operand.vmem [shape: f32[2,64,32], index: 1, kind: input, shape index: {}]   ;;  %s1929_s2 = inlined_call_operand.vmem [shape: f32[2,64,64], index: 2, kind: input, shape index: {}]   ;;  %s1930_s3 = inlined_call_operand.vmem [shape: f32[2,3,32,128], index: 3, kind: input, shape index: {}]   ;;  %s1931_s4 = inlined_call_operand.vmem [shape: f32[2,1,128], index: 4, kind: input, shape index: {}]   ;;  %s1932_s5 = inlined_call_operand.vmem [shape: f32[128,32], index: 5, kind: input, shape index: {}]   ;;  %s1933_s6 = inlined_call_operand.vmem [shape: f32[2,64,32], index: 6, kind: output, shape index: {}]  }
   0x1   :  { %s11_s23 = sshll.u32 %s1927_s0, 4  ;;  %s12_s23 = int_to_ptr.vmem [resolvable:$true] %s11_s23 }
   0x2   :  { %s1636_s24 = scalar_lea.vmem %s12_s23, 16  ;;  %p1641_p1 = scmp.lt.s32.totalorder %s12_s23, %s12_s23 }
   0x3   :  { %p1637_p0 = scmp.ne.s32.totalorder %s12_s23, %s1636_s24  ;;  %p1642_p2 = scmp.lt.s32.totalorder %s1636_s24, %s1636_s24 }
   0x5   :  { %p1643_p3 = por %p1642_p2, %p1641_p1 }
   0x7   :  { %p1644_p4 = pnand %p1643_p3, %p1637_p0 }
   0x9   :  { %1647 = shalt.err (!%p1644_p4)  }
   0xa   :  { %s1658_s25 = smov [#allocation3]  }
   0xb   :  { %14 = dma.vmem_to_smem %s12_s23, 16, %s1658_s25, [#allocation2] }
   0xc   :  { %1652 = dma.done.wait [#allocation2], 16 }
   0xd   :  { %1653 = vsyncadd [#allocation2], 4294967280 }
   0xe   :  { %16 = sfence }
   0xf   :  { %s1697_s26 = smov 0  }
  0x10 LB: > { %s1198_s0 = sadd.s32 4294967295, %s1656_s26   ;;  %p1202_p5 = scmp.ge.s32.totalorder %s1656_s26, 1  ;;  %s1656_s26 = sphi %s1697_s26, %s22_s26  }
  0x11   : > { %p212_p6 = scmp.lt.s32.totalorder %s1656_s26, 3 }
  0x13   : > { %p213_p7 = pnand %p1202_p5, %p212_p6 }
  0x14   : > { %p248_p8 = scmp.lt.s32.totalorder (!%p213_p7), %s1198_s0, 1  ;;  %v274_v0 = vld [vmem:[%s1929_s2] sm:$0xff] (!%p213_p7)  ;;  %vm282_vm0 = vcmask (!%p213_p7), 523264   ;;  %v275_v19 = vld [vmem:[%s1929_s2 + $0x8] sm:$0xff] (!%p213_p7)  ;;  %v276_v21 = vld [vmem:[%s1929_s2 + $0x10] sm:$0xff] (!%p213_p7)  ;;  %vm559_vm1 = vcmask (!%p213_p7), 261120  }
  0x15   : > { %216 = sbr.rel (%p213_p7) target bundleno = 726 (0x2d6), region = 40  ;;  %1378 = vmatprep.mubr.msk.f32.mxu0 (!%p213_p7), %vm282_vm0, %v274_v0  ;;  %v1216_v1 = vld [vmem:[%s1929_s2 + $0x40] sm:$0xff] (!%p213_p7)  ;;  %v1217_v20 = vld [vmem:[%s1929_s2 + $0x48] sm:$0xff] (!%p213_p7)  ;;  %v1218_v22 = vld [vmem:[%s1929_s2 + $0x50] sm:$0xff] (!%p213_p7)  ;;  %s1265_s13 = sld [smem:[#allocation3 + $0x4]] (!%p213_p7) }
  0x16   : > { %1406 = vmatprep.mubr.msk.f32.mxu1 (!%p213_p7), %vm282_vm0, %v1216_v1  ;;  %v277_v26 = vld [vmem:[%s1929_s2 + $0x18] sm:$0xff] (!%p213_p7)  ;;  %v278_v28 = vld [vmem:[%s1929_s2 + $0x20] sm:$0xff] (!%p213_p7)  ;;  %v279_v31 = vld [vmem:[%s1929_s2 + $0x28] sm:$0xff] (!%p213_p7) }
  0x17   : > { %v1219_v27 = vld [vmem:[%s1929_s2 + $0x58] sm:$0xff] (!%p213_p7)  ;;  %v1220_v29 = vld [vmem:[%s1929_s2 + $0x60] sm:$0xff] (!%p213_p7)  ;;  %v1221_v32 = vld [vmem:[%s1929_s2 + $0x68] sm:$0xff] (!%p213_p7) }
  0x18   : > { %v280_v33 = vld [vmem:[%s1929_s2 + $0x30] sm:$0xff] (!%p213_p7)  ;;  %v281_v35 = vld [vmem:[%s1929_s2 + $0x38] sm:$0xff] (!%p213_p7)  ;;  %v983_v43 = vld [vmem:[%s1932_s5] sm:$0xff] (!%p213_p7) }
  0x19   : > { %v1222_v34 = vld [vmem:[%s1929_s2 + $0x70] sm:$0xff] (!%p213_p7)  ;;  %v1223_v36 = vld [vmem:[%s1929_s2 + $0x78] sm:$0xff] (!%p213_p7)  ;;  %v984_v44 = vld [vmem:[%s1932_s5 + $0x8] sm:$0xff] (!%p213_p7) }
  0x1a   : > { %v985_v45 = vld [vmem:[%s1932_s5 + $0x10] sm:$0xff] (!%p213_p7)  ;;  %v1578_v46 = vpack.c.bf16 (!%p213_p7), %v984_v44, %v983_v43  ;;  %v986_v47 = vld [vmem:[%s1932_s5 + $0x18] sm:$0xff] (!%p213_p7)  ;;  %v987_v49 = vld [vmem:[%s1932_s5 + $0x20] sm:$0xff] (!%p213_p7) }
  0x1b   : > { %v1582_v48 = vpack.c.bf16 (!%p213_p7), %v986_v47, %v985_v45  ;;  %v988_v50 = vld [vmem:[%s1932_s5 + $0x28] sm:$0xff] (!%p213_p7)  ;;  %v989_v52 = vld [vmem:[%s1932_s5 + $0x30] sm:$0xff] (!%p213_p7)  ;;  %v990_v53 = vld [vmem:[%s1932_s5 + $0x38] sm:$0xff] (!%p213_p7) }
  0x1c   : > { %s1935_s0 = smov (!%p248_p8, %s1198_s0), 1  ;;  %v1586_v51 = vpack.c.bf16 %v988_v50, %v987_v49  ;;  %v1590_v54 = vpack.c.bf16 %v990_v53, %v989_v52  ;;  %v991_v55 = vld [vmem:[%s1932_s5 + $0x40] sm:$0xff]  ;;  %v992_v56 = vld [vmem:[%s1932_s5 + $0x48] sm:$0xff]  ;;  %v993_v58 = vld [vmem:[%s1932_s5 + $0x50] sm:$0xff] }
  0x1d   : > { %s1268_s7 = sshll.u32 %s1935_s0, 6  ;;  %s1626_s11 = smul.u32 96, %s1935_s0  ;;  %v1594_v57 = vpack.c.bf16 %v992_v56, %v991_v55  ;;  %v994_v59 = vld [vmem:[%s1932_s5 + $0x58] sm:$0xff]  ;;  %v995_v61 = vld [vmem:[%s1932_s5 + $0x60] sm:$0xff]  ;;  %v996_v62 = vld [vmem:[%s1932_s5 + $0x68] sm:$0xff]  ;;  %v1000_v55 = vstv %s1265_s13 }
  0x1e   : > { %s252_s10 = scalar_lea.vmem %s1928_s1, %s1268_s7  ;;  %v1598_v60 = vpack.c.bf16 %v994_v59, %v993_v58  ;;  %v1602_v63 = vpack.c.bf16 %v996_v62, %v995_v61  ;;  %s260_s12 = scalar_lea.vmem %s1931_s4, %s1935_s0 }
  0x1f   : > { %v1721_v2 = vld [vmem:[%s252_s10] sm:$0xff]  ;;  %v1723_v3 = vld [vmem:[%s252_s10 + $0x8] sm:$0xff]  ;;  %v1725_v4 = vld [vmem:[%s252_s10 + $0x10] sm:$0xff]  ;;  %s1747_s14 = scalar_lea.vmem %s1930_s3, %s1626_s11  ;;  %s265_s17 = scalar_lea.vmem %s1933_s6, %s1268_s7 }
  0x20   : > { %v1522_v5 = vpack.c.bf16 %v1723_v3, %v1721_v2  ;;  %v1729_v6 = vld [vmem:[%s252_s10 + $0x18] sm:$0xff]  ;;  %v1733_v8 = vld [vmem:[%s252_s10 + $0x20] sm:$0xff]  ;;  %v1735_v9 = vld [vmem:[%s252_s10 + $0x28] sm:$0xff]  ;;  %v1002_v56 = vmul.f32 %v1000_v55, %v1723_v3 }
  0x21   : > { %v1526_v7 = vpack.c.bf16 %v1729_v6, %v1725_v4  ;;  %v1530_v10 = vpack.c.bf16 %v1735_v9, %v1733_v8  ;;  %v1740_v11 = vld [vmem:[%s252_s10 + $0x30] sm:$0xff]  ;;  %v1742_v12 = vld [vmem:[%s252_s10 + $0x38] sm:$0xff]  ;;  %v1232_v14 = vld [vmem:[%s1747_s14 + $0x20] sm:$0xff]  ;;  %v1004_v61 = vmul.f32 %v1000_v55, %v1729_v6 }
  0x22   : > { %1523 = vmatprep.subr.bf16.mxu0 %v1522_v5  ;;  %1539 = vmatprep.subr.bf16.mxu1 %v1522_v5  ;;  %v1534_v13 = vpack.c.bf16 %v1742_v12, %v1740_v11  ;;  %v1233_v15 = vld [vmem:[%s1747_s14 + $0x28] sm:$0xff]  ;;  %v1234_v17 = vld [vmem:[%s1747_s14 + $0x30] sm:$0xff]  ;;  %v1235_v18 = vld [vmem:[%s1747_s14 + $0x38] sm:$0xff] }
  0x23   : > { %1525 = vmatpush3.bf16.msra.mxu0 %v1522_v5  ;;  %1541 = vmatpush3.bf16.msra.mxu1 %v1522_v5  ;;  %v1554_v16 = vpack.c.bf16 %v1233_v15, %v1232_v14  ;;  %v1558_v23 = vpack.c.bf16 %v1235_v18, %v1234_v17  ;;  %v550_v24 = vld [vmem:[%s1747_s14] sm:$0xff]  ;;  %v551_v25 = vld [vmem:[%s1747_s14 + $0x8] sm:$0xff]  ;;  %v552_v37 = vld [vmem:[%s1747_s14 + $0x10] sm:$0xff] }
  0x24   : > { %1527 = vmatprep.subr.bf16.mxu0 %v1526_v7  ;;  %1543 = vmatprep.subr.bf16.mxu1 %v1526_v7  ;;  %v1562_v30 = vpack.c.bf16 %v551_v25, %v550_v24  ;;  %v553_v38 = vld [vmem:[%s1747_s14 + $0x18] sm:$0xff]  ;;  %v1252_v40 = vld [vmem:[%s1747_s14 + $0x40] sm:$0xff]  ;;  %v1253_v41 = vld [vmem:[%s1747_s14 + $0x48] sm:$0xff] }
  0x25   : > { %v1566_v39 = vpack.c.bf16 %v553_v38, %v552_v37  ;;  %v1570_v42 = vpack.c.bf16 %v1253_v41, %v1252_v40  ;;  %v1254_v0 = vld [vmem:[%s1747_s14 + $0x50] sm:$0xff]  ;;  %v1255_v1 = vld [vmem:[%s1747_s14 + $0x58] sm:$0xff] }
  0x27   : > { %1529 = vmatpush3.bf16.msra.mxu0 %v1526_v7  ;;  %1545 = vmatpush3.bf16.msra.mxu1 %v1526_v7 }
  0x28   : > { %1531 = vmatprep.subr.bf16.mxu0 %v1530_v10  ;;  %1547 = vmatprep.subr.bf16.mxu1 %v1530_v10 }
  0x2b   : > { %1533 = vmatpush3.bf16.msra.mxu0 %v1530_v10  ;;  %1549 = vmatpush3.bf16.msra.mxu1 %v1530_v10 }
  0x2c   : > { %1535 = vmatprep.subr.bf16.mxu0 %v1534_v13  ;;  %1551 = vmatprep.subr.bf16.mxu1 %v1534_v13 }
  0x2f   : > { %1537 = vmatpush3.bf16.msra.mxu0 %v1534_v13  ;;  %1553 = vmatpush3.bf16.msra.mxu1 %v1534_v13  ;;  %v1574_v13 = vpack.c.bf16 %v1255_v1, %v1254_v0  ;;  %v1006_v1 = vmul.f32 %v1000_v55, %v1735_v9 }
  0x30   : > { %1555 = vmatprep.subr.bf16.mxu0 %v1554_v16  ;;  %1579 = vmatprep.subr.bf16.mxu1 %v1578_v46 }
  0x32   : > { %1379 = vmatmul.mubr.msk.f32.vlgmr.msra.gmra.mrb[0].mxu0 %vm282_vm0, %v275_v19  ;;  %1407 = vmatmul.mubr.msk.f32.vlgmr.msra.gmra.mrb[0].mxu1 %vm282_vm0, %v1217_v20 }
  0x33   : > { %1381 = vmatprep.mubr.msk.f32.mxu0 %vm282_vm0, %v276_v21  ;;  %1409 = vmatprep.mubr.msk.f32.mxu1 %vm282_vm0, %v1218_v22 }
  0x34   : > { %1557 = vmatpush3.bf16.msra.mxu0 %v1554_v16  ;;  %1581 = vmatpush3.bf16.msra.mxu1 %v1578_v46 }
  0x35   : > { %1559 = vmatprep.subr.bf16.mxu0 %v1558_v23  ;;  %1583 = vmatprep.subr.bf16.mxu1 %v1582_v48 }
  0x36   : > { %1382 = vmatmul.mubr.msk.f32.gmra.mrb[2].mxu0 %vm282_vm0, %v277_v26  ;;  %1410 = vmatmul.mubr.msk.f32.gmra.mrb[2].mxu1 %vm282_vm0, %v1219_v27  ;;  %v997_v27 = vld [vmem:[%s1932_s5 + $0x70] sm:$0xff] }
  0x37   : > { %1384 = vmatprep.mubr.msk.f32.mxu0 %vm282_vm0, %v278_v28  ;;  %1412 = vmatprep.mubr.msk.f32.mxu1 %vm282_vm0, %v1220_v29  ;;  %v998_v28 = vld [vmem:[%s1932_s5 + $0x78] sm:$0xff] }
  0x38   : > { %1561 = vmatpush3.bf16.msra.mxu0 %v1558_v23  ;;  %1585 = vmatpush3.bf16.msra.mxu1 %v1582_v48  ;;  %v1606_v29 = vpack.c.bf16 %v998_v28, %v997_v27 }
  0x39   : > { %1563 = vmatprep.subr.bf16.mxu0 %v1562_v30  ;;  %1587 = vmatprep.subr.bf16.mxu1 %v1586_v51 }
  0x3a   : > { %1385 = vmatmul.mubr.msk.f32.gmra.mrb[4].mxu0 %vm282_vm0, %v279_v31  ;;  %1413 = vmatmul.mubr.msk.f32.gmra.mrb[4].mxu1 %vm282_vm0, %v1221_v32 }
  0x3b   : > { %1387 = vmatprep.mubr.msk.f32.mxu0 %vm282_vm0, %v280_v33  ;;  %1415 = vmatprep.mubr.msk.f32.mxu1 %vm282_vm0, %v1222_v34 }
  0x3c   : > { %1589 = vmatpush3.bf16.msra.mxu1 %v1586_v51 }
  0x3d   : > { %1591 = vmatprep.subr.bf16.mxu1 %v1590_v54 }
  0x3e   : > { %1388 = vmatmul.mubr.msk.f32.gmra.mrb[6].mxu0 %vm282_vm0, %v281_v35  ;;  %1416 = vmatmul.mubr.msk.f32.gmra.mrb[6].mxu1 %vm282_vm0, %v1223_v36 }
  0x3f   : > { %1426 = vmatprep.mubr.msk.f32.mxu0 %vm559_vm1, %v1721_v2 }
  0x40   : > { %1593 = vmatpush3.bf16.msra.mxu1 %v1590_v54 }
  0x41   : > { %1595 = vmatprep.subr.bf16.mxu1 %v1594_v57 }
  0x42   : > { %1427 = vmatmul.mubr.msk.f32.vlgmr.msra.gmra.mrb[8].mxu0 %vm559_vm1, %v1723_v3 }
  0x43   : > { %1565 = vmatpush3.bf16.msra.mxu0 %v1562_v30  ;;  %1429 = vmatprep.mubr.msk.f32.mxu0 %vm559_vm1, %v1725_v4  ;;  %v1264_v30 = vld [vmem:[%s260_s12] ss:$0 sm:$0xff] }
  0x44   : > { %1567 = vmatprep.subr.bf16.mxu0 %v1566_v39  ;;  %1597 = vmatpush3.bf16.msra.mxu1 %v1594_v57  ;;  %v1001_v57 = vmul.f32 %v1000_v55, %v1721_v2 }
  0x45   : > { %1599 = vmatprep.subr.bf16.mxu1 %v1598_v60 }
  0x46   : > { %1430 = vmatmul.mubr.msk.f32.gmra.mrb[10].mxu0 %vm559_vm1, %v1729_v6 }
  0x47   : > { %1432 = vmatprep.mubr.msk.f32.mxu0 %vm559_vm1, %v1733_v8  ;;  %1569 = vmatpush3.bf16.msra.mxu0 %v1566_v39 }
  0x48   : > { %1571 = vmatprep.subr.bf16.mxu0 %v1570_v42  ;;  %1601 = vmatpush3.bf16.msra.mxu1 %v1598_v60 }
  0x49   : > { %1603 = vmatprep.subr.bf16.mxu1 %v1602_v63 }
  0x4a   : > { %1433 = vmatmul.mubr.msk.f32.gmra.mrb[12].mxu0 %vm559_vm1, %v1735_v9 }
  0x4b   : > { %1435 = vmatprep.mubr.msk.f32.mxu0 %vm559_vm1, %v1740_v11 }
  0x4c   : > { %1605 = vmatpush3.bf16.msra.mxu1 %v1602_v63  ;;  %v1003_v63 = vmul.f32 %v1000_v55, %v1725_v4  ;;  %v1008_v4 = vmul.f32 %v1000_v55, %v1742_v12 }
  0x4d   : > { %1607 = vmatprep.subr.bf16.mxu1 %v1606_v29 }
  0x4e   : > { %1436 = vmatmul.mubr.msk.f32.gmra.mrb[14].mxu0 %vm559_vm1, %v1742_v12 }
  0x50   : > { %1609 = vmatpush3.bf16.msra.mxu1 %v1606_v29 }
 0x105   : > { %v1380_v5 = vpop.f32.mrb[0].mxu0  ;;  %v1408_v7 = vpop.f32.mrb[0].mxu1 }
 0x106   : > { %v373_v10 = vpop.f32.mrb[1].mxu0  ;;  %v511_v14 = vpop.f32.mrb[1].mxu1 }
 0x107   : > { %1446 = vmatprep.mubr.msk.f32.mxu0 %vm559_vm1, %v373_v10 }
 0x108   : > { %1447 = vmatmul.mubr.msk.f32.vlgmr.msra.gmra.mrb[8].mxu0 %vm559_vm1, %v1380_v5 }
 0x109   : > { %1573 = vmatpush3.bf16.msra.mxu0 %v1570_v42  ;;  %v1383_v15 = vpop.f32.mrb[2].mxu0  ;;  %v1411_v16 = vpop.f32.mrb[2].mxu1 }
 0x10a   : > { %v383_v17 = vpop.f32.mrb[3].mxu0  ;;  %1575 = vmatprep.subr.bf16.mxu0 %v1574_v13  ;;  %v521_v18 = vpop.f32.mrb[3].mxu1 }
 0x10b   : > { %1449 = vmatprep.mubr.msk.f32.mxu0 %vm559_vm1, %v383_v17 }
 0x10c   : > { %1450 = vmatmul.mubr.msk.f32.gmra.mrb[10].mxu0 %vm559_vm1, %v1383_v15  ;;  %v1007_v15 = vmul.f32 %v1000_v55, %v1740_v11 }
 0x10d   : > { %v1386_v19 = vpop.f32.mrb[4].mxu0  ;;  %1577 = vmatpush3.bf16.msra.mxu0 %v1574_v13  ;;  %v1414_v20 = vpop.f32.mrb[4].mxu1 }
 0x10e   : > { %v393_v21 = vpop.f32.mrb[5].mxu0  ;;  %v531_v22 = vpop.f32.mrb[5].mxu1 }
 0x10f   : > { %1452 = vmatprep.mubr.msk.f32.mxu0 %vm559_vm1, %v393_v21 }
 0x110   : > { %1453 = vmatmul.mubr.msk.f32.gmra.mrb[12].mxu0 %vm559_vm1, %v1386_v19 }
 0x111   : > { %v1389_v23 = vpop.f32.mrb[6].mxu0  ;;  %v1417_v24 = vpop.f32.mrb[6].mxu1 }
 0x112   : > { %v403_v25 = vpop.f32.mrb[7].mxu0  ;;  %v541_v26 = vpop.f32.mrb[7].mxu1 }
 0x113   : > { %1455 = vmatprep.mubr.msk.f32.mxu0 %vm559_vm1, %v403_v25 }
 0x114   : > { %1456 = vmatmul.mubr.msk.f32.gmra.mrb[14].mxu0 %vm559_vm1, %v1389_v23 }
 0x115   : > { %1466 = vmatprep.mubr.msk.f32.mxu0 %vm559_vm1, %v511_v14 }
 0x118   : > { %1467 = vmatmul.mubr.msk.f32.vlgmr.msra.gmra.mrb[8].mxu0 %vm559_vm1, %v1408_v7  ;;  %v1005_v7 = vmul.f32 %v1000_v55, %v1733_v8 }
 0x119   : > { %1469 = vmatprep.mubr.msk.f32.mxu0 %vm559_vm1, %v521_v18 }
 0x11c   : > { %1470 = vmatmul.mubr.msk.f32.gmra.mrb[10].mxu0 %vm559_vm1, %v1411_v16 }
 0x11d   : > { %1472 = vmatprep.mubr.msk.f32.mxu0 %vm559_vm1, %v531_v22 }
 0x120   : > { %1473 = vmatmul.mubr.msk.f32.gmra.mrb[12].mxu0 %vm559_vm1, %v1414_v20 }
 0x121   : > { %1475 = vmatprep.mubr.msk.f32.mxu0 %vm559_vm1, %v541_v26 }
 0x124   : > { %1476 = vmatmul.mubr.msk.f32.gmra.mrb[14].mxu0 %vm559_vm1, %v1417_v24 }
 0x1eb   : > { %v1468_v31 = vpop.f32.mrb[8].mxu0 }
 0x1ec   : > { %v968_v32 = vadd.f32 %v1468_v31, %v1264_v30  ;;  %v913_v33 = vpop.f32.mrb[9].mxu0 }
 0x1ed   : > { %v967_v34 = vadd.f32 %v1264_v30, %v913_v33 }
 0x1ee   : > { %v976_v37 = vmax.f32 %v968_v32, 0.0 }
 0x1ef   : > { %v975_v35 = vmax.f32 %v967_v34, 0.0  ;;  %v1471_v36 = vpop.f32.mrb[10].mxu0 }
 0x1f0   : > { %v970_v38 = vadd.f32 %v1471_v36, %v1264_v30  ;;  %v923_v39 = vpop.f32.mrb[11].mxu0 }
 0x1f1   : > { %v969_v40 = vadd.f32 %v1264_v30, %v923_v39  ;;  %1510 = vmatprep.mubr.f32.mxu1 %v975_v35 }
 0x1f2   : > { %1511 = vmatmul.mubr.f32.vlgmr.msra.gmra.mrb[8].mxu1 %v976_v37  ;;  %v978_v43 = vmax.f32 %v970_v38, 0.0 }
 0x1f3   : > { %v977_v41 = vmax.f32 %v969_v40, 0.0  ;;  %v1474_v42 = vpop.f32.mrb[12].mxu0 }
 0x1f4   : > { %v972_v44 = vadd.f32 %v1474_v42, %v1264_v30  ;;  %v933_v45 = vpop.f32.mrb[13].mxu0 }
 0x1f5   : > { %v971_v46 = vadd.f32 %v1264_v30, %v933_v45  ;;  %1513 = vmatprep.mubr.f32.mxu1 %v977_v41 }
 0x1f6   : > { %1514 = vmatmul.mubr.f32.gmra.mrb[10].mxu1 %v978_v43  ;;  %v980_v49 = vmax.f32 %v972_v44, 0.0 }
 0x1f7   : > { %v979_v47 = vmax.f32 %v971_v46, 0.0  ;;  %v1477_v48 = vpop.f32.mrb[14].mxu0 }
 0x1f8   : > { %v974_v50 = vadd.f32 %v1477_v48, %v1264_v30  ;;  %v943_v51 = vpop.f32.mrb[15].mxu0 }
 0x1f9   : > { %v973_v52 = vadd.f32 %v1264_v30, %v943_v51  ;;  %1516 = vmatprep.mubr.f32.mxu1 %v979_v47 }
 0x1fa   : > { %1517 = vmatmul.mubr.f32.gmra.mrb[12].mxu1 %v980_v49  ;;  %v982_v54 = vmax.f32 %v974_v50, 0.0 }
 0x1fb   : > { %v981_v53 = vmax.f32 %v973_v52, 0.0 }
 0x1fd   : > { %1519 = vmatprep.mubr.f32.mxu1 %v981_v53 }
 0x1fe   : > { %1520 = vmatmul.mubr.f32.gmra.mrb[14].mxu1 %v982_v54 }
 0x2c5   : > { %v1512_v58 = vpop.f32.mrb[8].mxu1 }
 0x2c6   : > { %v1081_v59 = vadd.f32 %v1512_v58, %v1002_v56  ;;  %v1075_v60 = vpop.f32.mrb[9].mxu1 }
 0x2c7   : > { %v1076_v62 = vadd.f32 %v1075_v60, %v1001_v57 }
 0x2c8   : > { %1115 = vst.msk [vmem:[%s265_s17 + $0x8] sm:$0xff] %vm559_vm1, %v1081_v59 }
 0x2c9   : > { %1114 = vst.msk [vmem:[%s265_s17] sm:$0xff] %vm559_vm1, %v1076_v62  ;;  %v1515_v3 = vpop.f32.mrb[10].mxu1 }
 0x2ca   : > { %v1091_v0 = vadd.f32 %v1515_v3, %v1004_v61  ;;  %v1085_v2 = vpop.f32.mrb[11].mxu1 }
 0x2cb   : > { %v1086_v5 = vadd.f32 %v1085_v2, %v1003_v63 }
 0x2cc   : > { %1117 = vst.msk [vmem:[%s265_s17 + $0x18] sm:$0xff] %vm559_vm1, %v1091_v0 }
 0x2cd   : > { %1116 = vst.msk [vmem:[%s265_s17 + $0x10] sm:$0xff] %vm559_vm1, %v1086_v5  ;;  %v1518_v6 = vpop.f32.mrb[12].mxu1 }
 0x2ce   : > { %v1101_v10 = vadd.f32 %v1518_v6, %v1006_v1  ;;  %v1095_v13 = vpop.f32.mrb[13].mxu1 }
 0x2cf   : > { %v1096_v14 = vadd.f32 %v1095_v13, %v1005_v7 }
 0x2d0   : > { %1119 = vst.msk [vmem:[%s265_s17 + $0x28] sm:$0xff] %vm559_vm1, %v1101_v10 }
 0x2d1   : > { %1118 = vst.msk [vmem:[%s265_s17 + $0x20] sm:$0xff] %vm559_vm1, %v1096_v14  ;;  %v1521_v9 = vpop.f32.mrb[14].mxu1 }
 0x2d2   : > { %v1111_v16 = vadd.f32 %v1521_v9, %v1008_v4  ;;  %v1105_v17 = vpop.f32.mrb[15].mxu1 }
 0x2d3   : > { %v1106_v8 = vadd.f32 %v1105_v17, %v1007_v15 }
 0x2d4   : > { %1121 = vst.msk [vmem:[%s265_s17 + $0x38] sm:$0xff] %vm559_vm1, %v1111_v16 }
 0x2d5   : > { %1120 = vst.msk [vmem:[%s265_s17 + $0x30] sm:$0xff] %vm559_vm1, %v1106_v8 }
 0x2d6 PF: > { %s22_s26 = sadd.s32 1, %s1656_s26  }
 0x2d7   : > { %p19_p9 = scmp.ge.s32.totalorder %s22_s26, 4  }
 0x2d9   :  { %21 = sbr.rel (!%p19_p9) target bundleno = 16 (0x10), region = 79 }

</bundles_post_ra>
